<compile_context>
chip_gen: v6e
topology: v6e:2x2x1
jax: 0.10.0
libtpu: 0.0.40
codegen_flags: <defaults>
</compile_context>

<pallas_src>
import jax
import jax.numpy as jnp
from jax import lax
from jax.experimental import pallas as pl
from jax.experimental.pallas import tpu as pltpu

HIDDEN = 256


def _round_up(x, m):
    return ((x + m - 1) // m) * m


def _actor_kernel(s_ref, w1_ref, b1_ref, w2_ref, b2_ref, wh_ref, bh_ref, out_ref):
    # fc1 + relu
    h1 = jnp.dot(s_ref[...], w1_ref[...], preferred_element_type=jnp.float32) + b1_ref[...]
    h1 = jnp.maximum(h1, 0.0)

    # fc2 + relu (the only MXU-relevant matmul: 256x256)
    h2 = jnp.dot(h1, w2_ref[...], preferred_element_type=jnp.float32) + b2_ref[...]
    h2 = jnp.maximum(h2, 0.0)

    # fused heads: columns [0, A) are mu pre-activation, [A, 2A) are log_std
    heads = jnp.dot(h2, wh_ref[...], preferred_element_type=jnp.float32) + bh_ref[...]
    action_dim = heads.shape[-1] // 2

    # Compute both epilogues on the full slab, then lane-select. Avoids
    # non-lane-aligned slices / concatenation inside the kernel; the wasted
    # lanes are negligible (2*action_dim total).
    mu_all = jnp.tanh(heads)
    std_all = jnp.exp(jnp.clip(heads, -20.0, 2.0))
    col = lax.broadcasted_iota(jnp.int32, heads.shape, 1)
    out_ref[...] = jnp.where(col < action_dim, mu_all, std_all)


def init_actor_params(key, state_dim, action_dim, hidden=HIDDEN):
    """Deterministic init mimicking PyTorch nn.Linear default (U(-1/sqrt(fan_in), +))."""
    def linear(key, fan_in, fan_out):
        kw, kb = jax.random.split(key)
        bound = 1.0 / jnp.sqrt(fan_in)
        w = jax.random.uniform(kw, (fan_in, fan_out), jnp.float32, -bound, bound)
        b = jax.random.uniform(kb, (1, fan_out), jnp.float32, -bound, bound)
        return w, b

    k1, k2, k3, k4 = jax.random.split(key, 4)
    w1, b1 = linear(k1, state_dim, hidden)
    w2, b2 = linear(k2, hidden, hidden)
    w_mu, b_mu = linear(k3, hidden, action_dim)
    w_ls, b_ls = linear(k4, hidden, action_dim)
    return {
        "w1": w1, "b1": b1,
        "w2": w2, "b2": b2,
        "w_mu": w_mu, "b_mu": b_mu,
        "w_log_std": w_ls, "b_log_std": b_ls,
    }


def fuse_actor_params(params):
    """One-time param prep: concatenate the two head layers into one."""
    return {
        "w1": params["w1"], "b1": params["b1"],
        "w2": params["w2"], "b2": params["b2"],
        "w_heads": jnp.concatenate([params["w_mu"], params["w_log_std"]], axis=1),
        "b_heads": jnp.concatenate([params["b_mu"], params["b_log_std"]], axis=1),
    }


def actor_forward(state, fused_params, *, tb=512):
    """state: (B, state_dim) f32 -> (mu, std), each (B, action_dim) f32."""
    B, state_dim = state.shape
    w1, b1 = fused_params["w1"], fused_params["b1"]
    w2, b2 = fused_params["w2"], fused_params["b2"]
    wh, bh = fused_params["w_heads"], fused_params["b_heads"]
    two_a = wh.shape[1]
    action_dim = two_a // 2

    # Batch tiling: keep tiny batches as a single grid step, otherwise tile
    # rows by `tb` (well under v7x's 64 MiB VMEM at tb=512).
    TB = min(tb, _round_up(B, 8))
    B_pad = _round_up(B, TB)
    if B_pad != B:
        state = jnp.pad(state, ((0, B_pad - B), (0, 0)))

    const = lambda i: (0, 0)  # weights/biases: VMEM-resident across grid steps

    out = pl.pallas_call(
        _actor_kernel,
        out_shape=jax.ShapeDtypeStruct((B_pad, two_a), jnp.float32),
        grid=(B_pad // TB,),
        in_specs=[
            pl.BlockSpec((TB, state_dim), lambda i: (i, 0)),
            pl.BlockSpec((state_dim, HIDDEN), const),
            pl.BlockSpec((1, HIDDEN), const),
            pl.BlockSpec((HIDDEN, HIDDEN), const),
            pl.BlockSpec((1, HIDDEN), const),
            pl.BlockSpec((HIDDEN, two_a), const),
            pl.BlockSpec((1, two_a), const),
        ],
        out_specs=pl.BlockSpec((TB, two_a), lambda i: (i, 0)),
        compiler_params=pltpu.CompilerParams(
            dimension_semantics=("parallel",),
            vmem_limit_bytes=32 * 1024 * 1024,
        ),
    )(state, w1, b1, w2, b2, wh, bh)

    out = out[:B]
    return out[:, :action_dim], out[:, action_dim:]


def actor_forward_ref(state, params):
    """Pure-JAX reference (unfused params) for correctness checking."""
    h1 = jnp.maximum(state @ params["w1"] + params["b1"], 0.0)
    h2 = jnp.maximum(h1 @ params["w2"] + params["b2"], 0.0)
    mu = jnp.tanh(h2 @ params["w_mu"] + params["b_mu"])
    log_std = jnp.clip(h2 @ params["w_log_std"] + params["b_log_std"], -20.0, 2.0)
    return mu, jnp.exp(log_std)


if __name__ == "__main__":
    key = jax.random.PRNGKey(0)
    k_params, k_state1, k_state2 = jax.random.split(key, 3)

    state_dim = 8
    action_dim = 4

    params = init_actor_params(k_params, state_dim, action_dim)
    fused = fuse_actor_params(params)

    # Case 1: tiny batch (single grid step).
    state = jax.random.normal(k_state1, (8, state_dim), jnp.float32)
    mu, std = actor_forward(state, fused)
    mu = jax.block_until_ready(mu)
    std = jax.block_until_ready(std)
    mu_ref, std_ref = actor_forward_ref(state, params)
    assert jnp.allclose(mu, mu_ref, atol=2e-5, rtol=2e-5)
    assert jnp.allclose(std, std_ref, atol=2e-5, rtol=2e-5)

    # Case 2: exercise the batch grid + padding path (grid of 3 steps).
    state2 = jax.random.normal(k_state2, (136, state_dim), jnp.float32)
    mu2, std2 = actor_forward(state2, fused, tb=64)
    mu2 = jax.block_until_ready(mu2)
    std2 = jax.block_until_ready(std2)
    mu2_ref, std2_ref = actor_forward_ref(state2, params)
    assert jnp.allclose(mu2, mu2_ref, atol=2e-5, rtol=2e-5)
    assert jnp.allclose(std2, std2_ref, atol=2e-5, rtol=2e-5)

    print("KERNEL_OK")
</pallas_src>

<mosaic_0001>
module attributes {stable_mosaic.version = 11 : i64} {
  func.func @_actor_kernel(%arg0: i32, %arg1: memref<8x8xf32, #tpu.memory_space<vmem>>, %arg2: memref<8x256xf32, #tpu.memory_space<vmem>>, %arg3: memref<1x256xf32, #tpu.memory_space<vmem>>, %arg4: memref<256x256xf32, #tpu.memory_space<vmem>>, %arg5: memref<1x256xf32, #tpu.memory_space<vmem>>, %arg6: memref<256x8xf32, #tpu.memory_space<vmem>>, %arg7: memref<1x8xf32, #tpu.memory_space<vmem>>, %arg8: memref<8x8xf32, #tpu.memory_space<vmem>>) attributes {dimension_semantics = [#tpu.dimension_semantics<parallel>], iteration_bounds = array<i64: 1>, scalar_prefetch = 0 : i64, scratch_operands = 0 : i64, tpu.core_type = #tpu.core_type<tc>, window_params = [{transform_indices = @transform_0, window_bounds = array<i64: 8, 8>}, {pipeline_mode = #tpu.pipeline_mode<synchronous>, transform_indices = @transform_1, window_bounds = array<i64: 8, 256>}, {pipeline_mode = #tpu.pipeline_mode<synchronous>, transform_indices = @transform_2, window_bounds = array<i64: 1, 256>}, {pipeline_mode = #tpu.pipeline_mode<synchronous>, transform_indices = @transform_3, window_bounds = array<i64: 256, 256>}, {pipeline_mode = #tpu.pipeline_mode<synchronous>, transform_indices = @transform_4, window_bounds = array<i64: 1, 256>}, {pipeline_mode = #tpu.pipeline_mode<synchronous>, transform_indices = @transform_5, window_bounds = array<i64: 256, 8>}, {pipeline_mode = #tpu.pipeline_mode<synchronous>, transform_indices = @transform_6, window_bounds = array<i64: 1, 8>}, {transform_indices = @transform_7, window_bounds = array<i64: 8, 8>}]} {
    %c0 = arith.constant 0 : index
    %c0_0 = arith.constant 0 : index
    %0 = vector.load %arg1[%c0, %c0_0] : memref<8x8xf32, #tpu.memory_space<vmem>>, vector<8x8xf32>
    %c0_1 = arith.constant 0 : index
    %c0_2 = arith.constant 0 : index
    %1 = vector.load %arg2[%c0_1, %c0_2] : memref<8x256xf32, #tpu.memory_space<vmem>>, vector<8x256xf32>
    %cst = arith.constant dense<0.000000e+00> : vector<8x256xf32>
    %2 = tpu.matmul %0, %1, %cst {dimension_numbers = #tpu.dot_dimension_numbers<[1], [0], [0], [1], [0, 0, 1, 1], [], []>} : vector<8x8xf32>, vector<8x256xf32>, vector<8x256xf32> -> vector<8x256xf32>
    %c0_3 = arith.constant 0 : index
    %c0_4 = arith.constant 0 : index
    %3 = vector.load %arg3[%c0_3, %c0_4] : memref<1x256xf32, #tpu.memory_space<vmem>>, vector<1x256xf32>
    %4 = vector.broadcast %3 : vector<1x256xf32> to vector<8x256xf32>
    %5 = arith.addf %2, %4 : vector<8x256xf32>
    %cst_5 = arith.constant 0.000000e+00 : f32
    %6 = vector.broadcast %cst_5 : f32 to vector<8x256xf32>
    %7 = arith.maximumf %5, %6 : vector<8x256xf32>
    %c0_6 = arith.constant 0 : index
    %c0_7 = arith.constant 0 : index
    %8 = vector.load %arg4[%c0_6, %c0_7] : memref<256x256xf32, #tpu.memory_space<vmem>>, vector<256x256xf32>
    %cst_8 = arith.constant dense<0.000000e+00> : vector<8x256xf32>
    %9 = tpu.matmul %7, %8, %cst_8 {dimension_numbers = #tpu.dot_dimension_numbers<[1], [0], [0], [1], [0, 0, 1, 1], [], []>} : vector<8x256xf32>, vector<256x256xf32>, vector<8x256xf32> -> vector<8x256xf32>
    %c0_9 = arith.constant 0 : index
    %c0_10 = arith.constant 0 : index
    %10 = vector.load %arg5[%c0_9, %c0_10] : memref<1x256xf32, #tpu.memory_space<vmem>>, vector<1x256xf32>
    %11 = vector.broadcast %10 : vector<1x256xf32> to vector<8x256xf32>
    %12 = arith.addf %9, %11 : vector<8x256xf32>
    %cst_11 = arith.constant 0.000000e+00 : f32
    %13 = vector.broadcast %cst_11 : f32 to vector<8x256xf32>
    %14 = arith.maximumf %12, %13 : vector<8x256xf32>
    %c0_12 = arith.constant 0 : index
    %c0_13 = arith.constant 0 : index
    %15 = vector.load %arg6[%c0_12, %c0_13] : memref<256x8xf32, #tpu.memory_space<vmem>>, vector<256x8xf32>
    %cst_14 = arith.constant dense<0.000000e+00> : vector<8x8xf32>
    %16 = tpu.matmul %14, %15, %cst_14 {dimension_numbers = #tpu.dot_dimension_numbers<[1], [0], [0], [1], [0, 0, 1, 1], [], []>} : vector<8x256xf32>, vector<256x8xf32>, vector<8x8xf32> -> vector<8x8xf32>
    %c0_15 = arith.constant 0 : index
    %c0_16 = arith.constant 0 : index
    %17 = vector.load %arg7[%c0_15, %c0_16] : memref<1x8xf32, #tpu.memory_space<vmem>>, vector<1x8xf32>
    %18 = vector.broadcast %17 : vector<1x8xf32> to vector<8x8xf32>
    %19 = arith.addf %16, %18 : vector<8x8xf32>
    %20 = math.tanh %19 : vector<8x8xf32>
    %cst_17 = arith.constant -2.000000e+01 : f32
    %cst_18 = arith.constant 2.000000e+00 : f32
    %21 = vector.broadcast %cst_17 : f32 to vector<8x8xf32>
    %22 = arith.maximumf %21, %19 : vector<8x8xf32>
    %23 = vector.broadcast %cst_18 : f32 to vector<8x8xf32>
    %24 = arith.minimumf %23, %22 : vector<8x8xf32>
    %25 = math.exp %24 : vector<8x8xf32>
    %26 = tpu.iota {dimensions = array<i32: 1>} : vector<8x8xi32>
    %c4_i32 = arith.constant 4 : i32
    %27 = vector.broadcast %c4_i32 : i32 to vector<8x8xi32>
    %28 = arith.cmpi slt, %26, %27 : vector<8x8xi32>
    %29 = arith.select %28, %20, %25 : vector<8x8xi1>, vector<8x8xf32>
    %c0_19 = arith.constant 0 : index
    %c0_20 = arith.constant 0 : index
    %30 = vector.load %arg8[%c0_19, %c0_20] : memref<8x8xf32, #tpu.memory_space<vmem>>, vector<8x8xf32>
    tpu.vector_store %arg8[%c0_19, %c0_20], %29 {strides = array<i32>} : memref<8x8xf32, #tpu.memory_space<vmem>>, vector<8x8xf32>,
    return
  }
  func.func @transform_0(%arg0: i32) -> (i32, i32) {
    %c0_i32 = arith.constant 0 : i32
    %c0_i32_0 = arith.constant 0 : i32
    return %arg0, %c0_i32 : i32, i32
  }
  func.func @transform_1(%arg0: i32) -> (i32, i32) {
    %c0_i32 = arith.constant 0 : i32
    %c0_i32_0 = arith.constant 0 : i32
    %c0_i32_1 = arith.constant 0 : i32
    return %c0_i32, %c0_i32_0 : i32, i32
  }
  func.func @transform_2(%arg0: i32) -> (i32, i32) {
    %c0_i32 = arith.constant 0 : i32
    %c0_i32_0 = arith.constant 0 : i32
    %c0_i32_1 = arith.constant 0 : i32
    return %c0_i32, %c0_i32_0 : i32, i32
  }
  func.func @transform_3(%arg0: i32) -> (i32, i32) {
    %c0_i32 = arith.constant 0 : i32
    %c0_i32_0 = arith.constant 0 : i32
    %c0_i32_1 = arith.constant 0 : i32
    return %c0_i32, %c0_i32_0 : i32, i32
  }
  func.func @transform_4(%arg0: i32) -> (i32, i32) {
    %c0_i32 = arith.constant 0 : i32
    %c0_i32_0 = arith.constant 0 : i32
    %c0_i32_1 = arith.constant 0 : i32
    return %c0_i32, %c0_i32_0 : i32, i32
  }
  func.func @transform_5(%arg0: i32) -> (i32, i32) {
    %c0_i32 = arith.constant 0 : i32
    %c0_i32_0 = arith.constant 0 : i32
    %c0_i32_1 = arith.constant 0 : i32
    return %c0_i32, %c0_i32_0 : i32, i32
  }
  func.func @transform_6(%arg0: i32) -> (i32, i32) {
    %c0_i32 = arith.constant 0 : i32
    %c0_i32_0 = arith.constant 0 : i32
    %c0_i32_1 = arith.constant 0 : i32
    return %c0_i32, %c0_i32_0 : i32, i32
  }
  func.func @transform_7(%arg0: i32) -> (i32, i32) {
    %c0_i32 = arith.constant 0 : i32
    %c0_i32_0 = arith.constant 0 : i32
    return %arg0, %c0_i32 : i32, i32
  }
}

</mosaic_0001>

<bundles_post_ra>
// kernel: tpu_custom_call.1
= control target key start
LH: loop header
LB: loop body
LE: loop exit
PB: predicated region body
PF: predicated region fallthrough
CT: control target
= control target key end

     0   :  { %12 = vsyncpa [#allocation3], 0  ;;  %s673_s0 = inlined_call_operand.vmem [shape: f32[8,8], index: 0, kind: input, shape index: {}]   ;;  %s674_s1 = inlined_call_operand.vmem [shape: f32[8,256], index: 1, kind: input, shape index: {}]   ;;  %s675_s2 = inlined_call_operand.vmem [shape: f32[1,256], index: 2, kind: input, shape index: {}]   ;;  %s676_s3 = inlined_call_operand.hbm [shape: f32[256,256], index: 3, kind: input, shape index: {}]   ;;  %s677_s4 = inlined_call_operand.vmem [shape: f32[1,256], index: 4, kind: input, shape index: {}]   ;;  %s678_s5 = inlined_call_operand.vmem [shape: f32[256,8], index: 5, kind: input, shape index: {}]   ;;  %s679_s6 = inlined_call_operand.vmem [shape: f32[1,8], index: 6, kind: input, shape index: {}]   ;;  %s680_s7 = inlined_call_operand.hbm [shape: f32[8,8], index: 7, kind: output, shape index: {}]  }
   0x1   :  { %13 = vsyncpa [#allocation4], 0  ;;  %s506_s24 = smov [#allocation2]  }
   0x2   :  { %s25_s25 = sshll.u32 %s506_s24, 4  ;;  %s26_s25 = int_to_ptr.vmem [resolvable:$true] %s25_s25 }
   0x3   :  { %s470_s26 = scalar_lea.vmem %s26_s25, 8192  ;;  %p475_p1 = scmp.lt.s32.totalorder %s26_s25, %s26_s25 }
   0x4   :  { %p471_p0 = scmp.ne.s32.totalorder %s26_s25, %s470_s26  ;;  %p476_p2 = scmp.lt.s32.totalorder %s470_s26, %s470_s26 }
   0x6   :  { %p477_p3 = por %p476_p2, %p475_p1 }
   0x8   :  { %p478_p4 = pnand %p477_p3, %p471_p0 }
   0xa   :  { %481 = shalt.err (!%p478_p4)
}
   0xb   :  { %s507_s27 = smov 256   ;;  %s508_s28 = smov 16  }
   0xc   :  { %31 = dma.hbm_to_vmem [thread:$0]  %s676_s3, 8192, %s26_s25, [#allocation3], %s507_s27, %s507_s27, %s508_s28  }
   0xd   :  { %502 = dma.done.wait [#allocation3], 8192  }
   0xe   :  { %503 = vsyncadd [#allocation3], 4294959104  ;;  %v509_v0 = vmov 0.0   ;;  %v43_v1 = vld [vmem:[%s674_s1 + $0x8] sm:$0xff]  ;;  %v42_v2 = vld [vmem:[%s674_s1] sm:$0xff]  ;;  %vm56_vm0 = vcmask 64512  }
   0xf   :  { %124 = vmatprep.mubr.f32.mxu0 %v509_v0  ;;  %v41_v3 = vld [vmem:[%s673_s0] sm:$0xff]  ;;  %90 = vmatprep.subr.mxu0 %v43_v1  ;;  %v164_v4 = vld [vmem:[#allocation2 + $0xf8] sm:$0xff]  ;;  %v163_v5 = vld [vmem:[#allocation2 + $0xf0] sm:$0xff] }
  0x10   :  { %v162_v6 = vld [vmem:[#allocation2 + $0xe8] sm:$0xff]  ;;  %91 = vmatpush1.msra.mxu0 %v42_v2  ;;  %209 = vmatprep.subr.mxu1 %v164_v4  ;;  %v161_v7 = vld [vmem:[#allocation2 + $0xe0] sm:$0xff]  ;;  %v160_v8 = vld [vmem:[#allocation2 + $0xd8] sm:$0xff] }
  0x11   :  { %416 = vmatmul.mubr.msk.f32.vlgmr.msra.gmra.mxu0 %vm56_vm0, %v41_v3  ;;  %210 = vmatpush1.msra.mxu1 %v163_v5  ;;  %v159_v9 = vld [vmem:[#allocation2 + $0xd0] sm:$0xff]  ;;  %v158_v10 = vld [vmem:[#allocation2 + $0xc8] sm:$0xff]  ;;  %v157_v11 = vld [vmem:[#allocation2 + $0xc0] sm:$0xff] }
  0x12   :  { %211 = vmatprep.subr.mxu1 %v162_v6  ;;  %v156_v12 = vld [vmem:[#allocation2 + $0xb8] sm:$0xff]  ;;  %v155_v13 = vld [vmem:[#allocation2 + $0xb0] sm:$0xff]  ;;  %v154_v14 = vld [vmem:[#allocation2 + $0xa8] sm:$0xff] }
  0x13   :  { %212 = vmatpush1.msra.mxu1 %v161_v7  ;;  %v153_v15 = vld [vmem:[#allocation2 + $0xa0] sm:$0xff]  ;;  %v152_v16 = vld [vmem:[#allocation2 + $0x98] sm:$0xff]  ;;  %v151_v17 = vld [vmem:[#allocation2 + $0x90] sm:$0xff] }
  0x14   :  { %213 = vmatprep.subr.mxu1 %v160_v8  ;;  %v150_v18 = vld [vmem:[#allocation2 + $0x88] sm:$0xff]  ;;  %v149_v19 = vld [vmem:[#allocation2 + $0x80] sm:$0xff]  ;;  %v148_v20 = vld [vmem:[#allocation2 + $0x78] sm:$0xff] }
  0x15   :  { %214 = vmatpush1.msra.mxu1 %v159_v9  ;;  %v147_v21 = vld [vmem:[#allocation2 + $0x70] sm:$0xff]  ;;  %v146_v22 = vld [vmem:[#allocation2 + $0x68] sm:$0xff]  ;;  %v145_v23 = vld [vmem:[#allocation2 + $0x60] sm:$0xff] }
  0x16   :  { %215 = vmatprep.subr.mxu1 %v158_v10  ;;  %v144_v24 = vld [vmem:[#allocation2 + $0x58] sm:$0xff]  ;;  %v143_v25 = vld [vmem:[#allocation2 + $0x50] sm:$0xff]  ;;  %v142_v26 = vld [vmem:[#allocation2 + $0x48] sm:$0xff] }
  0x17   :  { %216 = vmatpush1.msra.mxu1 %v157_v11  ;;  %v141_v27 = vld [vmem:[#allocation2 + $0x40] sm:$0xff]  ;;  %v140_v28 = vld [vmem:[#allocation2 + $0x38] sm:$0xff]  ;;  %v139_v29 = vld [vmem:[#allocation2 + $0x30] sm:$0xff] }
  0x18   :  { %217 = vmatprep.subr.mxu1 %v156_v12  ;;  %v138_v30 = vld [vmem:[#allocation2 + $0x28] sm:$0xff]  ;;  %v137_v31 = vld [vmem:[#allocation2 + $0x20] sm:$0xff]  ;;  %v136_v32 = vld [vmem:[#allocation2 + $0x18] sm:$0xff] }
  0x19   :  { %218 = vmatpush1.msra.mxu1 %v155_v13  ;;  %v135_v33 = vld [vmem:[#allocation2 + $0x10] sm:$0xff]  ;;  %v134_v34 = vld [vmem:[#allocation2 + $0x8] sm:$0xff]  ;;  %v133_v35 = vld [vmem:[#allocation2] sm:$0xff] }
  0x1a   :  { %219 = vmatprep.subr.mxu1 %v154_v14  ;;  %v196_v36 = vld [vmem:[#allocation2 + $0x1f8] sm:$0xff]  ;;  %v195_v37 = vld [vmem:[#allocation2 + $0x1f0] sm:$0xff]  ;;  %v194_v38 = vld [vmem:[#allocation2 + $0x1e8] sm:$0xff] }
  0x1b   :  { %220 = vmatpush1.msra.mxu1 %v153_v15  ;;  %v193_v39 = vld [vmem:[#allocation2 + $0x1e0] sm:$0xff]  ;;  %v192_v40 = vld [vmem:[#allocation2 + $0x1d8] sm:$0xff]  ;;  %v191_v41 = vld [vmem:[#allocation2 + $0x1d0] sm:$0xff] }
  0x1c   :  { %221 = vmatprep.subr.mxu1 %v152_v16  ;;  %v190_v42 = vld [vmem:[#allocation2 + $0x1c8] sm:$0xff]  ;;  %v189_v43 = vld [vmem:[#allocation2 + $0x1c0] sm:$0xff]  ;;  %v188_v44 = vld [vmem:[#allocation2 + $0x1b8] sm:$0xff] }
  0x1d   :  { %222 = vmatpush1.msra.mxu1 %v151_v17  ;;  %v187_v45 = vld [vmem:[#allocation2 + $0x1b0] sm:$0xff]  ;;  %v186_v46 = vld [vmem:[#allocation2 + $0x1a8] sm:$0xff]  ;;  %v185_v47 = vld [vmem:[#allocation2 + $0x1a0] sm:$0xff] }
  0x1e   :  { %223 = vmatprep.subr.mxu1 %v150_v18  ;;  %v184_v48 = vld [vmem:[#allocation2 + $0x198] sm:$0xff]  ;;  %v183_v49 = vld [vmem:[#allocation2 + $0x190] sm:$0xff]  ;;  %v182_v50 = vld [vmem:[#allocation2 + $0x188] sm:$0xff] }
  0x1f   :  { %224 = vmatpush1.msra.mxu1 %v149_v19  ;;  %v181_v51 = vld [vmem:[#allocation2 + $0x180] sm:$0xff]  ;;  %v180_v52 = vld [vmem:[#allocation2 + $0x178] sm:$0xff]  ;;  %v179_v53 = vld [vmem:[#allocation2 + $0x170] sm:$0xff] }
  0x20   :  { %225 = vmatprep.subr.mxu1 %v148_v20  ;;  %v178_v54 = vld [vmem:[#allocation2 + $0x168] sm:$0xff]  ;;  %v177_v55 = vld [vmem:[#allocation2 + $0x160] sm:$0xff]  ;;  %v176_v56 = vld [vmem:[#allocation2 + $0x158] sm:$0xff] }
  0x21   :  { %226 = vmatpush1.msra.mxu1 %v147_v21  ;;  %v175_v57 = vld [vmem:[#allocation2 + $0x150] sm:$0xff]  ;;  %v174_v58 = vld [vmem:[#allocation2 + $0x148] sm:$0xff]  ;;  %v173_v59 = vld [vmem:[#allocation2 + $0x140] sm:$0xff] }
  0x22   :  { %227 = vmatprep.subr.mxu1 %v146_v22  ;;  %v172_v60 = vld [vmem:[#allocation2 + $0x138] sm:$0xff]  ;;  %v171_v61 = vld [vmem:[#allocation2 + $0x130] sm:$0xff]  ;;  %v170_v62 = vld [vmem:[#allocation2 + $0x128] sm:$0xff] }
  0x23   :  { %228 = vmatpush1.msra.mxu1 %v145_v23  ;;  %v169_v63 = vld [vmem:[#allocation2 + $0x120] sm:$0xff]  ;;  %v168_v0 = vld [vmem:[#allocation2 + $0x118] sm:$0xff]  ;;  %v167_v1 = vld [vmem:[#allocation2 + $0x110] sm:$0xff] }
  0x24   :  { %229 = vmatprep.subr.mxu1 %v144_v24  ;;  %v166_v2 = vld [vmem:[#allocation2 + $0x108] sm:$0xff]  ;;  %v165_v3 = vld [vmem:[#allocation2 + $0x100] sm:$0xff]  ;;  %v313_v4 = vld [vmem:[%s678_s5 + $0xf8] sm:$0xff] }
  0x25   :  { %230 = vmatpush1.msra.mxu1 %v143_v25  ;;  %v297_v5 = vld [vmem:[%s678_s5 + $0x78] sm:$0xff]  ;;  %v312_v6 = vld [vmem:[%s678_s5 + $0xf0] sm:$0xff]  ;;  %418 = vmatprep.subr.mxu0 %v313_v4  ;;  %v311_v8 = vld [vmem:[%s678_s5 + $0xe8] sm:$0xff] }
  0x26   :  { %231 = vmatprep.subr.mxu1 %v142_v26  ;;  %v296_v7 = vld [vmem:[%s678_s5 + $0x70] sm:$0xff]  ;;  %419 = vmatpush3.msra.mxu0 %v297_v5  ;;  %v295_v9 = vld [vmem:[%s678_s5 + $0x68] sm:$0xff]  ;;  %v310_v10 = vld [vmem:[%s678_s5 + $0xe0] sm:$0xff] }
  0x27   :  { %232 = vmatpush1.msra.mxu1 %v141_v27  ;;  %420 = vmatprep.subr.mxu0 %v312_v6  ;;  %v294_v11 = vld [vmem:[%s678_s5 + $0x60] sm:$0xff]  ;;  %v309_v12 = vld [vmem:[%s678_s5 + $0xd8] sm:$0xff]  ;;  %v308_v14 = vld [vmem:[%s678_s5 + $0xd0] sm:$0xff] }
  0x28   :  { %233 = vmatprep.subr.mxu1 %v140_v28  ;;  %421 = vmatpush3.msra.mxu0 %v296_v7  ;;  %v293_v13 = vld [vmem:[%s678_s5 + $0x58] sm:$0xff]  ;;  %v292_v15 = vld [vmem:[%s678_s5 + $0x50] sm:$0xff]  ;;  %v307_v16 = vld [vmem:[%s678_s5 + $0xc8] sm:$0xff]  ;;  %v46_v28 = vlaneseq }
  0x29   :  { %234 = vmatpush1.msra.mxu1 %v139_v29  ;;  %422 = vmatprep.subr.mxu0 %v311_v8  ;;  %v291_v17 = vld [vmem:[%s678_s5 + $0x48] sm:$0xff]  ;;  %v306_v18 = vld [vmem:[%s678_s5 + $0xc0] sm:$0xff]  ;;  %v305_v20 = vld [vmem:[%s678_s5 + $0xb8] sm:$0xff] }
  0x2a   :  { %235 = vmatprep.subr.mxu1 %v138_v30  ;;  %423 = vmatpush3.msra.mxu0 %v295_v9  ;;  %v290_v19 = vld [vmem:[%s678_s5 + $0x40] sm:$0xff]  ;;  %v289_v21 = vld [vmem:[%s678_s5 + $0x38] sm:$0xff]  ;;  %v304_v22 = vld [vmem:[%s678_s5 + $0xb0] sm:$0xff]  ;;  %v47_v29 = vshrl.u32 %v46_v28, 7 }
  0x2b   :  { %236 = vmatpush1.msra.mxu1 %v137_v31  ;;  %424 = vmatprep.subr.mxu0 %v310_v10  ;;  %v288_v23 = vld [vmem:[%s678_s5 + $0x30] sm:$0xff]  ;;  %v303_v24 = vld [vmem:[%s678_s5 + $0xa8] sm:$0xff]  ;;  %v302_v26 = vld [vmem:[%s678_s5 + $0xa0] sm:$0xff] }
  0x2c   :  { %237 = vmatprep.subr.mxu1 %v136_v32  ;;  %425 = vmatpush3.msra.mxu0 %v294_v11  ;;  %v287_v25 = vld [vmem:[%s678_s5 + $0x28] sm:$0xff]  ;;  %v286_v27 = vld [vmem:[%s678_s5 + $0x20] sm:$0xff]  ;;  %v48_v30 = vsub.s32 0, %v47_v29  ;;  %v52_v32 = vsub.s32 1, %v47_v29 }
  0x2d   :  { %238 = vmatpush1.msra.mxu1 %v135_v33  ;;  %426 = vmatprep.subr.mxu0 %v309_v12  ;;  %v44_v31 = vld [vmem:[%s675_s2] sm:$0x3] }
  0x2e   :  { %239 = vmatprep.subr.mxu1 %v134_v34  ;;  %427 = vmatpush3.msra.mxu0 %v293_v13  ;;  %v49_v33 = vrot.slane %v44_v31, %v48_v30  ;;  %v53_v34 = vrot.slane %v44_v31, %v52_v32 }
  0x2f   :  { %240 = vmatpush1.msra.mxu1 %v133_v35  ;;  %428 = vmatprep.subr.mxu0 %v308_v14 }
  0x30   :  { %241 = vmatprep.subr.mxu1 %v196_v36  ;;  %429 = vmatpush3.msra.mxu0 %v292_v15 }
  0x31   :  { %242 = vmatpush2.msra.mxu1 %v195_v37  ;;  %430 = vmatprep.subr.mxu0 %v307_v16 }
  0x32   :  { %243 = vmatprep.subr.mxu1 %v194_v38  ;;  %431 = vmatpush3.msra.mxu0 %v291_v17 }
  0x33   :  { %244 = vmatpush2.msra.mxu1 %v193_v39  ;;  %432 = vmatprep.subr.mxu0 %v306_v18 }
  0x34   :  { %245 = vmatprep.subr.mxu1 %v192_v40  ;;  %433 = vmatpush3.msra.mxu0 %v290_v19 }
  0x35   :  { %246 = vmatpush2.msra.mxu1 %v191_v41  ;;  %434 = vmatprep.subr.mxu0 %v305_v20  ;;  %v301_v41 = vld [vmem:[%s678_s5 + $0x98] sm:$0xff] }
  0x36   :  { %247 = vmatprep.subr.mxu1 %v190_v42  ;;  %435 = vmatpush3.msra.mxu0 %v289_v21  ;;  %v285_v42 = vld [vmem:[%s678_s5 + $0x18] sm:$0xff] }
  0x37   :  { %248 = vmatpush2.msra.mxu1 %v189_v43  ;;  %436 = vmatprep.subr.mxu0 %v304_v22  ;;  %v300_v43 = vld [vmem:[%s678_s5 + $0x90] sm:$0xff] }
  0x38   :  { %249 = vmatprep.subr.mxu1 %v188_v44  ;;  %437 = vmatpush3.msra.mxu0 %v288_v23  ;;  %v284_v44 = vld [vmem:[%s678_s5 + $0x10] sm:$0xff] }
  0x39   :  { %250 = vmatpush2.msra.mxu1 %v187_v45  ;;  %438 = vmatprep.subr.mxu0 %v303_v24  ;;  %v299_v45 = vld [vmem:[%s678_s5 + $0x88] sm:$0xff] }
  0x3a   :  { %251 = vmatprep.subr.mxu1 %v186_v46  ;;  %439 = vmatpush3.msra.mxu0 %v287_v25  ;;  %v283_v46 = vld [vmem:[%s678_s5 + $0x8] sm:$0xff] }
  0x3b   :  { %252 = vmatpush2.msra.mxu1 %v185_v47  ;;  %440 = vmatprep.subr.mxu0 %v302_v26  ;;  %v298_v47 = vld [vmem:[%s678_s5 + $0x80] sm:$0xff] }
  0x3c   :  { %253 = vmatprep.subr.mxu1 %v184_v48  ;;  %441 = vmatpush3.msra.mxu0 %v286_v27  ;;  %v282_v48 = vld [vmem:[%s678_s5] sm:$0xff] }
  0x3d   :  { %254 = vmatpush2.msra.mxu1 %v183_v49  ;;  %442 = vmatprep.subr.mxu0 %v301_v41  ;;  %v197_v49 = vld [vmem:[%s677_s4] sm:$0x3]  ;;  %s510_s4 = smov [#allocation5]  }
  0x3e   :  { %255 = vmatprep.subr.mxu1 %v182_v50  ;;  %443 = vmatpush3.msra.mxu0 %v285_v42  ;;  %v202_v50 = vrot.slane %v197_v49, %v48_v30  ;;  %s407_s5 = sshll.u32 %s510_s4, 4  ;;  %s408_s5 = int_to_ptr.vmem [resolvable:$true] %s407_s5 }
  0x3f   :  { %256 = vmatpush2.msra.mxu1 %v181_v51  ;;  %444 = vmatprep.subr.mxu0 %v300_v43  ;;  %v206_v51 = vrot.slane %v197_v49, %v52_v32  ;;  %s482_s28 = scalar_lea.vmem %s408_s5, 128  ;;  %p487_p6 = scmp.lt.s32.totalorder %s408_s5, %s408_s5 }
  0x40   :  { %257 = vmatprep.subr.mxu1 %v180_v52  ;;  %445 = vmatpush3.msra.mxu0 %v284_v44  ;;  %p483_p5 = scmp.ne.s32.totalorder %s408_s5, %s482_s28  ;;  %p488_p7 = scmp.lt.s32.totalorder %s482_s28, %s482_s28 }
  0x41   :  { %258 = vmatpush2.msra.mxu1 %v179_v53  ;;  %446 = vmatprep.subr.mxu0 %v299_v45 }
  0x42   :  { %259 = vmatprep.subr.mxu1 %v178_v54  ;;  %447 = vmatpush3.msra.mxu0 %v283_v46  ;;  %p489_p8 = por %p488_p7, %p487_p6 }
  0x43   :  { %260 = vmatpush2.msra.mxu1 %v177_v55  ;;  %448 = vmatprep.subr.mxu0 %v298_v47 }
  0x44   :  { %261 = vmatprep.subr.mxu1 %v176_v56  ;;  %449 = vmatpush3.msra.mxu0 %v282_v48  ;;  %p490_p9 = pnand %p489_p8, %p483_p5 }
  0x45   :  { %262 = vmatpush2.msra.mxu1 %v175_v57 }
  0x46   :  { %263 = vmatprep.subr.mxu1 %v174_v58 }
  0x47   :  { %264 = vmatpush2.msra.mxu1 %v173_v59  ;;  %v417_v59 = vld [vmem:[%s679_s6] ss:$0 sm:$0xff] }
  0x48   :  { %265 = vmatprep.subr.mxu1 %v172_v60 }
  0x49   :  { %266 = vmatpush2.msra.mxu1 %v171_v61 }
  0x4a   :  { %267 = vmatprep.subr.mxu1 %v170_v62 }
  0x4b   :  { %268 = vmatpush2.msra.mxu1 %v169_v63 }
  0x4c   :  { %269 = vmatprep.subr.mxu1 %v168_v0 }
  0x4d   :  { %270 = vmatpush2.msra.mxu1 %v167_v1 }
  0x4e   :  { %271 = vmatprep.subr.mxu1 %v166_v2  ;;  %v397_v2 = vand.u32 127, %v46_v28 }
  0x4f   :  { %272 = vmatpush2.msra.mxu1 %v165_v3 }
  0x50   :  { %vm398_vm1 = vcmp.lt.s32.totalorder %v397_v2, 4 }
  0xd1   :  { %v126_v35 = vpop.f32.mrf.mxu0 }
  0xd2   :  { %v127_v36 = vadd.f32 %v126_v35, %v49_v33 }
  0xd3   :  { %v128_v37 = vpop.f32.mrf.mxu0 }
  0xd4   :  { %v129_v38 = vadd.f32 %v128_v37, %v53_v34  ;;  %v131_v40 = vmax.f32 %v127_v36, 0.0 }
  0xd6   :  { %v132_v39 = vmax.f32 %v129_v38, 0.0 }
  0xd8   :  { %273 = vmatprep.mubr.f32.mxu1 %v132_v39 }
  0xd9   :  { %274 = vmatmul.mubr.f32.vlgmr.msra.gmra.mxu1 %v131_v40 }
 0x199   :  { %v275_v52 = vpop.f32.mrf.mxu1 }
 0x19a   :  { %v276_v53 = vadd.f32 %v275_v52, %v202_v50 }
 0x19b   :  { %v277_v54 = vpop.f32.mrf.mxu1 }
 0x19c   :  { %v278_v55 = vadd.f32 %v277_v54, %v206_v51  ;;  %v280_v57 = vmax.f32 %v276_v53, 0.0 }
 0x19e   :  { %v281_v56 = vmax.f32 %v278_v55, 0.0 }
 0x1a0   :  { %385 = vmatprep.mubr.f32.mxu0 %v281_v56 }
 0x1a1   :  { %386 = vmatmul.mubr.f32.vlgmr.msra.gmra.mxu0 %v280_v57 }
 0x261   :  { %v450_v58 = vpop.f32.mrf.mxu0 }
 0x263   :  { %v451_v60 = vpop.f32.mrf.mxu0 }
 0x264   :  { %v452_v61 = vadd.f32 %v451_v60, %v450_v58 }
 0x266   :  { %v388_v62 = vadd.f32 %v452_v61, %v417_v59 }
 0x268   :  { %v392_v63 = vmax.f32 %v388_v62, -20.0  ;;  %458 = vtanh.f32 %v388_v62 }
 0x26a   :  { %v393_v0 = vmin.f32 %v392_v63, 2.0 }
 0x26c   :  { %v394_v1 = vmul.f32 1.442695, %v393_v0 }
 0x26e   :  { %460 = vpow2.f32 %v394_v1 }
 0x275   :  { %v459_v3 = vpop.eup %458 }
 0x27b   :  { %v461_v4 = vpop.eup %460 }
 0x27c   :  { %v399_v5 = vsel %vm398_vm1, %v459_v3, %v461_v4 }
 0x27d   :  { %400 = vst.msk [vmem:[#allocation5] sm:$0xff] %vm56_vm0, %v399_v5 }
 0x27e   :  { %493 = shalt.err (!%p490_p9)
}
 0x27f   :  { %410 = dma.vmem_to_hbm [thread:$0]  %s408_s5, 128, %s680_s7, [#allocation4]  }
 0x280   :  { %504 = dma.done.wait [#allocation4], 128  }
 0x281   :  { %505 = vsyncadd [#allocation4], 4294967168 }
 0x282   :  { %414 = vsyncpa [#allocation3], 1 }
 0x283   :  { %415 = vsyncpa [#allocation4], 1 }

</bundles_post_ra>
